<compile_context>
chip_gen: v6e
topology: v6e:2x2x1
jax: 0.10.0
libtpu: 0.0.40
codegen_flags: <defaults>
</compile_context>

<pallas_src>
import jax
import jax.numpy as jnp
from jax.experimental import pallas as pl
from jax.experimental.pallas import tpu as pltpu

# F.normalize default eps (the module's self.eps is never passed to F.normalize)
_EPS = 1e-12
_EPS_SQ = _EPS * _EPS  # 1e-24, still a normal f32

_LANE = 128


def _l2_normalize_kernel(x_ref, o_ref):
    x = x_ref[...]
    xf = x.astype(jnp.float32)
    sq_sum = jnp.sum(xf * xf, axis=-1, keepdims=True)
    # 1 / max(||x||, eps) == rsqrt(max(sq_sum, eps^2))
    inv = jax.lax.rsqrt(jnp.maximum(sq_sum, _EPS_SQ))
    if x.dtype == jnp.float32:
        o_ref[...] = xf * inv
    else:
        # Keep the elementwise pass in the native (narrow) dtype: halves vreg/VMEM
        # pressure on v6e/v7x where the VPU supports bf16.
        o_ref[...] = (x * inv.astype(x.dtype)).astype(o_ref.dtype)


def _choose_block_rows(n_rows, d_pad, dtype_bytes, sublane):
    row_bytes = d_pad * dtype_bytes
    target_block_bytes = 2 * 1024 * 1024   # ~2 MiB input block -> near HBM roofline
    live_vmem_cap = 16 * 1024 * 1024       # in+out, double buffered ~= 4 * block
    br = min(target_block_bytes // row_bytes,
             live_vmem_cap // (4 * row_bytes),
             2048)
    br = max(sublane, (br // sublane) * sublane)
    # Prefer >= 2 grid steps so v7x can shard rows across both TensorCores.
    if n_rows <= br and n_rows > sublane:
        half = -(-n_rows // 2)
        br = max(sublane, ((half + sublane - 1) // sublane) * sublane)
    return br


def lnorm_forward(x, block_rows=None):
    """Pallas implementation of LNormModule.forward (L=2): x / max(||x||_2, 1e-12) along dim=-1."""
    orig_shape = x.shape
    D = orig_shape[-1]
    x2d = x.reshape(-1, D)
    N = x2d.shape[0]
    dtype = x2d.dtype
    dtype_bytes = jnp.dtype(dtype).itemsize
    sublane = 8 * max(1, 4 // dtype_bytes)  # 8 for f32, 16 for bf16

    # Pad the feature dim to a lane-dense multiple of 128 (zeros don't change the L2 norm).
    D_pad = ((D + _LANE - 1) // _LANE) * _LANE

    if block_rows is None:
        block_rows = _choose_block_rows(N, D_pad, dtype_bytes, sublane)
    else:
        block_rows = max(sublane, (block_rows // sublane) * sublane)

    # Pad rows up to a tile multiple (padded rows normalize to 0 and are sliced off).
    N_pad = ((N + block_rows - 1) // block_rows) * block_rows
    if (N_pad != N) or (D_pad != D):
        x2d = jnp.pad(x2d, ((0, N_pad - N), (0, D_pad - D)))

    grid = (N_pad // block_rows,)

    cost = pl.CostEstimate(
        flops=3 * N_pad * D_pad,
        transcendentals=N_pad,
        bytes_accessed=2 * N_pad * D_pad * dtype_bytes,
    )

    out = pl.pallas_call(
        _l2_normalize_kernel,
        out_shape=jax.ShapeDtypeStruct((N_pad, D_pad), dtype),
        grid_spec=pltpu.PrefetchScalarGridSpec(
            num_scalar_prefetch=0,
            grid=grid,
            in_specs=[pl.BlockSpec((block_rows, D_pad), lambda i: (i, 0))],
            out_specs=pl.BlockSpec((block_rows, D_pad), lambda i: (i, 0)),
        ),
        compiler_params=pltpu.CompilerParams(
            dimension_semantics=("parallel",),
        ),
        cost_estimate=cost,
    )(x2d)

    if (N_pad != N) or (D_pad != D):
        out = out[:N, :D]
    return out.reshape(orig_shape)


def _ref_normalize(x):
    nrm = jnp.sqrt(jnp.sum(x.astype(jnp.float32) ** 2, axis=-1, keepdims=True))
    return (x.astype(jnp.float32) / jnp.maximum(nrm, _EPS)).astype(x.dtype)


if __name__ == "__main__":
    key = jax.random.PRNGKey(0)

    # Case 1: graph-like input, lane-aligned feature dim.
    x = jax.random.normal(key, (256, 128), dtype=jnp.float32)
    y = jax.block_until_ready(lnorm_forward(x))
    assert jnp.allclose(y, _ref_normalize(x), atol=1e-5, rtol=1e-5), "mismatch (256,128)"

    # Case 2: 4-D input with small, non-128-aligned feature dim (exercises D/N padding).
    key2 = jax.random.split(key)[0]
    x2 = jax.random.normal(key2, (2, 4, 16, 16), dtype=jnp.float32)
    y2 = jax.block_until_ready(lnorm_forward(x2))
    assert jnp.allclose(y2, _ref_normalize(x2), atol=1e-5, rtol=1e-5), "mismatch (2,4,16,16)"

    print("KERNEL_OK")
</pallas_src>

<mosaic_0001>
module attributes {stable_mosaic.version = 11 : i64} {
  func.func @_l2_normalize_kernel(%arg0: i32, %arg1: memref<128x128xf32, #tpu.memory_space<vmem>>, %arg2: memref<128x128xf32, #tpu.memory_space<vmem>>) attributes {dimension_semantics = [#tpu.dimension_semantics<parallel>], iteration_bounds = array<i64: 2>, scalar_prefetch = 0 : i64, scratch_operands = 0 : i64, tpu.core_type = #tpu.core_type<tc>, window_params = [{transform_indices = @transform_0, window_bounds = array<i64: 128, 128>}, {transform_indices = @transform_1, window_bounds = array<i64: 128, 128>}]} {
    %c0 = arith.constant 0 : index
    %c0_0 = arith.constant 0 : index
    %0 = vector.load %arg1[%c0, %c0_0] : memref<128x128xf32, #tpu.memory_space<vmem>>, vector<128x128xf32>
    %1 = arith.mulf %0, %0 : vector<128x128xf32>
    %cst = arith.constant dense<0.000000e+00> : vector<128xf32>
    %2 = vector.multi_reduction <add>, %1, %cst [1] : vector<128x128xf32> to vector<128xf32>
    %3 = vector.shape_cast %2 : vector<128xf32> to vector<128x1xf32>
    %cst_1 = arith.constant 1.000000e-24 : f32
    %4 = vector.broadcast %cst_1 : f32 to vector<128x1xf32>
    %5 = arith.maximumf %3, %4 : vector<128x1xf32>
    %6 = math.rsqrt %5 : vector<128x1xf32>
    %7 = vector.broadcast %6 : vector<128x1xf32> to vector<128x128xf32>
    %8 = arith.mulf %0, %7 : vector<128x128xf32>
    %c0_2 = arith.constant 0 : index
    %c0_3 = arith.constant 0 : index
    %9 = vector.load %arg2[%c0_2, %c0_3] : memref<128x128xf32, #tpu.memory_space<vmem>>, vector<128x128xf32>
    tpu.vector_store %arg2[%c0_2, %c0_3], %8 {strides = array<i32>} : memref<128x128xf32, #tpu.memory_space<vmem>>, vector<128x128xf32>,
    return
  }
  func.func @transform_0(%arg0: i32) -> (i32, i32) {
    %c0_i32 = arith.constant 0 : i32
    %c0_i32_0 = arith.constant 0 : i32
    return %arg0, %c0_i32 : i32, i32
  }
  func.func @transform_1(%arg0: i32) -> (i32, i32) {
    %c0_i32 = arith.constant 0 : i32
    %c0_i32_0 = arith.constant 0 : i32
    return %arg0, %c0_i32 : i32, i32
  }
}

</mosaic_0001>

<bundles_post_ra>
// kernel: tpu_custom_call.1
= control target key start
LH: loop header
LB: loop body
LE: loop exit
PB: predicated region body
PF: predicated region fallthrough
CT: control target
= control target key end

     0   :  { %6 = vsyncpa [#allocation3], 0  ;;  %s835_s0 = inlined_call_operand.hbm [shape: f32[256,128], index: 0, kind: input, shape index: {}]   ;;  %s836_s1 = inlined_call_operand.hbm [shape: f32[256,128], index: 1, kind: output, shape index: {}]  }
   0x1   :  { %8 = vsyncpa [#allocation3 + $0x1], 0 }
   0x2   :  { %9 = vsyncpa [#allocation4], 0 }
   0x3   :  { %11 = vsyncpa [#allocation4 + $0x1], 0  ;;  %s560_s6 = smov 0   ;;  %s562_s7 = smov 0  }
   0x4   :  { %s564_s8 = smov 0   ;;  %s566_s9 = smov 0  }
   0x5 LB: > { %s581_s10 = sadd.s32 4294967295, %s542_s9   ;;  %s352_s11 = sadd.s32 4294967294, %s542_s9   ;;  %s542_s9 = sphi %s566_s9, %s851_s9   ;;  %s538_s8 = sphi %s564_s8, %s850_s8   ;;  %s534_s7 = sphi %s562_s7, %s849_s7   ;;  %s530_s6 = sphi %s560_s6, %s848_s6  }
   0x6   : > { %s585_s12 = sadd.s32 1, %s542_s9   ;;  %s24_s13 = sadd.s32 1, %s538_s8 }
   0x7   : > { %s21_s14 = ssub.s32 %s542_s9, %s585_s12  ;;  %p31_p0 = scmp.ne.s32.totalorder %s538_s8, %s534_s7 }
   0x8   : > { %p22_p1 = scmp.eq.s32.totalorder %s21_s14, 0  ;;  %p32_p2 = scmp.eq.s32.totalorder %s542_s9, 0 }
   0x9   : > { %p37_p3 = scmp.ne.s32.totalorder %s534_s7, %s530_s6  ;;  %p38_p4 = scmp.eq.s32.totalorder %s581_s10, 0 }
   0xa   : > { %s597_s15 = scalar_select %p22_p1, %s538_s8, %s24_s13  }
   0xb   : > { %p599_p5 = por %p32_p2, %p31_p0  ;;  %p603_p6 = por %p38_p4, %p37_p3 }
   0xc   : > { %p61_p7 = scmp.eq.s32.totalorder %s581_s10, 1  ;;  %p67_p8 = scmp.eq.s32.totalorder %s352_s11, 1 }
   0xd   : > { %s840_s17 = scalar_select %p603_p6, 1, 0 }
   0xe   : > { %p380_p10 = scmp.lt.s32.totalorder %s542_s9, 2  ;;  %p610_p11 = por %p61_p7, %p31_p0 }
   0xf   : > { %p614_p12 = por %p67_p8, %p37_p3  ;;  %s87_s20 = sand.u32 1, %s538_s8  }
  0x10   : > { %s841_s18 = scalar_select %p610_p11, 1, 0 }
  0x11   : > { %s842_s19 = scalar_select %p614_p12, 1, 0 }
  0x12   : > { %s366_s21 = sshll.u32 %s542_s9, 11  ;;  %s355_s22 = sshll.u32 %s87_s20, 7 }
  0x13   : > { %s623_s25 = scalar_lea.hbm %s835_s0, %s366_s21  ;;  %s91_s26 = scalar_lea.vmem [#allocation2], %s355_s22 }
  0x14   : > { %s98_s27 = sshll.u32 %s91_s26, 4  ;;  %p627_p13 = pnand %p380_p10, %p599_p5  ;;  %s631_s27 = int_to_ptr.vmem [resolvable:$true] %s98_s27 }
  0x15   : > { %s633_s29 = scalar_lea.sflag [#allocation3], %s87_s20  ;;  %s450_s30 = scalar_lea.hbm %s623_s25, 2048 }
  0x16   : > { %p451_p0 = scmp.ne.s32.totalorder %s623_s25, %s450_s30  ;;  %p452_p1 = pneg %p627_p13 }
  0x17   : > { %s455_s4 = scalar_lea.hbm %s835_s0, 4096  ;;  %p456_p4 = scmp.lt.s32.totalorder %s623_s25, %s835_s0 }
  0x18   : > { %p453_p2 = pnand %p452_p1, %p451_p0  ;;  %p457_p5 = scmp.lt.s32.totalorder %s455_s4, %s450_s30 }
  0x1a   : > { %p454_p3 = pneg %p453_p2  ;;  %p458_p7 = por %p457_p5, %p456_p4 }
  0x1c   : > { %p459_p8 = pnand %p458_p7, %p454_p3 }
  0x1e   : > { %462 = shalt.err (!%p459_p8)
}
  0x1f   : > { %s463_s13 = scalar_lea.vmem %s631_s27, 2048  ;;  %s544_s14 = smov [#allocation2]  }
  0x20   : > { %p464_p10 = scmp.ne.s32.totalorder %s631_s27, %s463_s13  ;;  %s468_s16 = sshll.u32 %s544_s14, 4  ;;  %s469_s16 = int_to_ptr.vmem [resolvable:$false] %s468_s16 }
  0x21   : > { %s470_s20 = scalar_lea.vmem %s469_s16, 4096  ;;  %p471_p2 = scmp.lt.s32.totalorder %s631_s27, %s469_s16 }
  0x22   : > { %p466_p9 = pnand %p464_p10, %p452_p1  ;;  %p472_p12 = scmp.lt.s32.totalorder %s470_s20, %s463_s13 }
  0x24   : > { %p467_p0 = pneg %p466_p9  ;;  %p473_p11 = por %p472_p12, %p471_p2 }
  0x26   : > { %p474_p6 = pnand %p473_p11, %p467_p0 }
  0x28   : > { %477 = shalt.err (!%p474_p6)
}
  0x29   : > { %s545_s21 = smov 128   ;;  %s546_s22 = smov 8  }
  0x2a   : > { %375 = dma.hbm_to_vmem [thread:$0]  (!%p627_p13), %s623_s25, 2048, %s631_s27, %s633_s29, %s545_s21, %s545_s21, %s546_s22  }
  0x2b   : > { %p358_p9 = scmp.ge.s32.totalorder %s542_s9, 1  ;;  %p106_p1 = scmp.lt.s32.totalorder %s542_s9, 3 }
  0x2d   : > { %p107_p3 = pnand %p358_p9, %p106_p1 }
  0x2e   : > { %s657_s23 = sand.u32 (!%p107_p3), 1, %s534_s7   ;;  %p844_p6 = scmp.ne.s32.totalorder (!%p107_p3), %s840_s17, 0 }
  0x2f   : > { %110 = sbr.rel (%p107_p3) target bundleno = 255 (0xff), region = 24  ;;  %s359_s24 = sshll.u32 (!%p107_p3), %s657_s23, 7 }
  0x30   : > { %s113_s26 = scalar_lea.sflag (!%p107_p3), [#allocation3], %s657_s23  ;;  %s663_s30 = scalar_lea.vmem (!%p107_p3), [#allocation2], %s359_s24 }
  0x34   : > { %521 = dma.done.wait (%p844_p6), %s113_s26, 2048  }
  0x35   : > { %523 = vsyncadd (%p844_p6), %s113_s26, 4294965248  ;;  %v670_v0 = vld [vmem:[%s663_s30 + $0x10] sm:$0xff]  ;;  %v673_v1 = vld [vmem:[%s663_s30] sm:$0xff]  ;;  %s753_s17 = scalar_lea.vmem [#allocation5], %s359_s24  ;;  %s367_s25 = sshll.u32 %s581_s10, 11 }
  0x36   : > { %v676_v2 = vld [vmem:[%s663_s30 + $0x18] sm:$0xff]  ;;  %v155_v3 = vmul.f32 %v670_v0, %v670_v0  ;;  %v153_v4 = vmul.f32 %v673_v1, %v673_v1  ;;  %v683_v5 = vld [vmem:[%s663_s30 + $0x8] sm:$0xff]  ;;  %v693_v9 = vld [vmem:[%s663_s30 + $0x20] sm:$0xff]  ;;  %s279_s27 = sshll.u32 %s753_s17, 4  ;;  %s787_s2 = scalar_lea.hbm %s836_s1, %s367_s25  ;;  %s789_s27 = int_to_ptr.vmem [resolvable:$true] %s279_s27 }
  0x37   : > { %v156_v6 = vmul.f32 %v676_v2, %v676_v2  ;;  %v154_v7 = vmul.f32 %v683_v5, %v683_v5  ;;  %v690_v8 = vld [vmem:[%s663_s30 + $0x28] sm:$0xff]  ;;  %v157_v11 = vmul.f32 %v693_v9, %v693_v9  ;;  %v700_v12 = vld [vmem:[%s663_s30 + $0x38] sm:$0xff]  ;;  %v703_v13 = vld [vmem:[%s663_s30 + $0x30] sm:$0xff]  ;;  %s266_s10 = scalar_lea.sflag [#allocation4], %s657_s23  ;;  %s478_s3 = scalar_lea.vmem %s789_s27, 2048 }
  0x38   : > { %173 = vadd.xlane.f32.xlu1 %v155_v3  ;;  %169 = vadd.xlane.f32.xlu0 %v153_v4  ;;  %v158_v10 = vmul.f32 %v690_v8, %v690_v8  ;;  %v160_v14 = vmul.f32 %v700_v12, %v700_v12  ;;  %v159_v15 = vmul.f32 %v703_v13, %v703_v13  ;;  %v710_v16 = vld [vmem:[%s663_s30 + $0x48] sm:$0xff]  ;;  %v713_v17 = vld [vmem:[%s663_s30 + $0x40] sm:$0xff]  ;;  %v720_v20 = vld [vmem:[%s663_s30 + $0x58] sm:$0xff]  ;;  %p479_p11 = scmp.ne.s32.totalorder %s789_s27, %s478_s3  ;;  %p845_p12 = scmp.ne.s32.totalorder %s841_s18, 0 }
  0x39   : > { %v162_v18 = vmul.f32 %v710_v16, %v710_v16  ;;  %v161_v19 = vmul.f32 %v713_v17, %v713_v17  ;;  %v723_v21 = vld [vmem:[%s663_s30 + $0x50] sm:$0xff]  ;;  %v164_v22 = vmul.f32 %v720_v20, %v720_v20  ;;  %v730_v24 = vld [vmem:[%s663_s30 + $0x68] sm:$0xff]  ;;  %v733_v25 = vld [vmem:[%s663_s30 + $0x60] sm:$0xff]  ;;  %s547_s4 = smov [#allocation5]  }
  0x3a   : > { %v163_v23 = vmul.f32 %v723_v21, %v723_v21  ;;  %v166_v26 = vmul.f32 %v730_v24, %v730_v24  ;;  %v165_v27 = vmul.f32 %v733_v25, %v733_v25  ;;  %v740_v28 = vld [vmem:[%s663_s30 + $0x78] sm:$0xff]  ;;  %v743_v29 = vld [vmem:[%s663_s30 + $0x70] sm:$0xff]  ;;  %p480_p13 = pnand %p479_p11, %p845_p12  ;;  %s482_s5 = sshll.u32 %s547_s4, 4  ;;  %s483_s5 = int_to_ptr.vmem [resolvable:$false] %s482_s5 }
  0x3b   : > { %v168_v30 = vmul.f32 %v740_v28, %v740_v28  ;;  %v167_v31 = vmul.f32 %v743_v29, %v743_v29  ;;  %s484_s11 = scalar_lea.vmem %s483_s5, 4096  ;;  %p485_p5 = scmp.lt.s32.totalorder %s789_s27, %s483_s5 }
  0x3c   : > { %175 = vadd.xlane.f32.xlu1 %v156_v6  ;;  %171 = vadd.xlane.f32.xlu0 %v154_v7  ;;  %p481_p4 = pneg %p480_p13  ;;  %p486_p7 = scmp.lt.s32.totalorder %s484_s11, %s478_s3 }
  0x3e   : > { %p487_p8 = por %p486_p7, %p485_p5 }
  0x40   : > { %179 = vadd.xlane.f32.xlu1 %v158_v10  ;;  %177 = vadd.xlane.f32.xlu0 %v157_v11  ;;  %p488_p10 = pnand %p487_p8, %p481_p4 }
  0x44   : > { %183 = vadd.xlane.f32.xlu1 %v160_v14  ;;  %181 = vadd.xlane.f32.xlu0 %v159_v15 }
  0x48   : > { %187 = vadd.xlane.f32.xlu1 %v162_v18  ;;  %185 = vadd.xlane.f32.xlu0 %v161_v19 }
  0x4c   : > { %191 = vadd.xlane.f32.xlu1 %v164_v22  ;;  %189 = vadd.xlane.f32.xlu0 %v163_v23 }
  0x50   : > { %195 = vadd.xlane.f32.xlu1 %v166_v26  ;;  %193 = vadd.xlane.f32.xlu0 %v165_v27 }
  0x54   : > { %199 = vadd.xlane.f32.xlu1 %v168_v30  ;;  %197 = vadd.xlane.f32.xlu0 %v167_v31 }
  0xc1   : > { %v174_v32 = vpop.xlane.xlu1 %173  ;;  %v170_v33 = vpop.xlane.xlu0 %169 }
  0xc2   : > { %v203_v34 = vmax.f32 %v174_v32, 1e-24  ;;  %v201_v35 = vmax.f32 %v170_v33, 1e-24 }
  0xc4   : > { %418 = vrsqrt.f32 %v203_v34 }
  0xc5   : > { %420 = vrsqrt.f32 %v201_v35  ;;  %v176_v36 = vpop.xlane.xlu1 %175  ;;  %v172_v37 = vpop.xlane.xlu0 %171 }
  0xc6   : > { %v204_v38 = vmax.f32 %v176_v36, 1e-24  ;;  %v202_v39 = vmax.f32 %v172_v37, 1e-24 }
  0xc8   : > { %422 = vrsqrt.f32 %v204_v38 }
  0xc9   : > { %424 = vrsqrt.f32 %v202_v39  ;;  %v180_v40 = vpop.xlane.xlu1 %179  ;;  %v178_v41 = vpop.xlane.xlu0 %177 }
  0xca   : > { %v206_v42 = vmax.f32 %v180_v40, 1e-24  ;;  %v205_v43 = vmax.f32 %v178_v41, 1e-24 }
  0xcc   : > { %426 = vrsqrt.f32 %v206_v42 }
  0xcd   : > { %428 = vrsqrt.f32 %v205_v43  ;;  %v184_v44 = vpop.xlane.xlu1 %183  ;;  %v182_v45 = vpop.xlane.xlu0 %181 }
  0xce   : > { %v208_v46 = vmax.f32 %v184_v44, 1e-24  ;;  %v207_v47 = vmax.f32 %v182_v45, 1e-24 }
  0xd0   : > { %430 = vrsqrt.f32 %v208_v46 }
  0xd1   : > { %v419_v48 = vpop.eup %418  ;;  %432 = vrsqrt.f32 %v207_v47  ;;  %v188_v49 = vpop.xlane.xlu1 %187 }
  0xd2   : > { %v186_v50 = vpop.xlane.xlu0 %185  ;;  %v421_v51 = vpop.eup %420  ;;  %v235_v52 = vmul.f32 %v419_v48, %v670_v0  ;;  %v210_v53 = vmax.f32 %v188_v49, 1e-24 }
  0xd3   : > { %v209_v54 = vmax.f32 %v186_v50, 1e-24  ;;  %v233_v55 = vmul.f32 %v421_v51, %v673_v1 }
  0xd4   : > { %251 = vst [vmem:[%s753_s17 + $0x10] sm:$0xff] %v235_v52  ;;  %434 = vrsqrt.f32 %v210_v53 }
  0xd5   : > { %v423_v56 = vpop.eup %422  ;;  %249 = vst [vmem:[%s753_s17] sm:$0xff] %v233_v55  ;;  %436 = vrsqrt.f32 %v209_v54  ;;  %v192_v57 = vpop.xlane.xlu1 %191 }
  0xd6   : > { %v190_v58 = vpop.xlane.xlu0 %189  ;;  %v425_v59 = vpop.eup %424  ;;  %v236_v60 = vmul.f32 %v423_v56, %v676_v2  ;;  %v212_v61 = vmax.f32 %v192_v57, 1e-24 }
  0xd7   : > { %v211_v62 = vmax.f32 %v190_v58, 1e-24  ;;  %v234_v63 = vmul.f32 %v425_v59, %v683_v5 }
  0xd8   : > { %252 = vst [vmem:[%s753_s17 + $0x18] sm:$0xff] %v236_v60  ;;  %438 = vrsqrt.f32 %v212_v61 }
  0xd9   : > { %v427_v0 = vpop.eup %426  ;;  %250 = vst [vmem:[%s753_s17 + $0x8] sm:$0xff] %v234_v63  ;;  %440 = vrsqrt.f32 %v211_v62  ;;  %v196_v1 = vpop.xlane.xlu1 %195 }
  0xda   : > { %v194_v3 = vpop.xlane.xlu0 %193  ;;  %v429_v4 = vpop.eup %428  ;;  %v238_v6 = vmul.f32 %v427_v0, %v690_v8  ;;  %v214_v7 = vmax.f32 %v196_v1, 1e-24 }
  0xdb   : > { %v213_v10 = vmax.f32 %v194_v3, 1e-24  ;;  %v237_v2 = vmul.f32 %v429_v4, %v693_v9 }
  0xdc   : > { %254 = vst [vmem:[%s753_s17 + $0x28] sm:$0xff] %v238_v6  ;;  %442 = vrsqrt.f32 %v214_v7 }
  0xdd   : > { %v431_v5 = vpop.eup %430  ;;  %253 = vst [vmem:[%s753_s17 + $0x20] sm:$0xff] %v237_v2  ;;  %444 = vrsqrt.f32 %v213_v10  ;;  %v200_v11 = vpop.xlane.xlu1 %199 }
  0xde   : > { %v198_v14 = vpop.xlane.xlu0 %197  ;;  %v433_v15 = vpop.eup %432  ;;  %v240_v18 = vmul.f32 %v431_v5, %v700_v12  ;;  %v216_v19 = vmax.f32 %v200_v11, 1e-24 }
  0xdf   : > { %v215_v8 = vmax.f32 %v198_v14, 1e-24  ;;  %v239_v22 = vmul.f32 %v433_v15, %v703_v13 }
  0xe0   : > { %256 = vst [vmem:[%s753_s17 + $0x38] sm:$0xff] %v240_v18  ;;  %446 = vrsqrt.f32 %v216_v19 }
  0xe1   : > { %v435_v9 = vpop.eup %434  ;;  %255 = vst [vmem:[%s753_s17 + $0x30] sm:$0xff] %v239_v22  ;;  %448 = vrsqrt.f32 %v215_v8 }
  0xe2   : > { %v437_v23 = vpop.eup %436  ;;  %v242_v26 = vmul.f32 %v435_v9, %v710_v16 }
  0xe3   : > { %v241_v27 = vmul.f32 %v437_v23, %v713_v17 }
  0xe4   : > { %258 = vst [vmem:[%s753_s17 + $0x48] sm:$0xff] %v242_v26 }
  0xe5   : > { %v439_v12 = vpop.eup %438  ;;  %257 = vst [vmem:[%s753_s17 + $0x40] sm:$0xff] %v241_v27 }
  0xe6   : > { %v441_v30 = vpop.eup %440  ;;  %v244_v13 = vmul.f32 %v439_v12, %v720_v20 }
  0xe7   : > { %v243_v31 = vmul.f32 %v441_v30, %v723_v21 }
  0xe8   : > { %260 = vst [vmem:[%s753_s17 + $0x58] sm:$0xff] %v244_v13 }
  0xe9   : > { %v443_v32 = vpop.eup %442  ;;  %259 = vst [vmem:[%s753_s17 + $0x50] sm:$0xff] %v243_v31 }
  0xea   : > { %v445_v33 = vpop.eup %444  ;;  %v246_v16 = vmul.f32 %v443_v32, %v730_v24 }
  0xeb   : > { %v245_v17 = vmul.f32 %v445_v33, %v733_v25 }
  0xec   : > { %262 = vst [vmem:[%s753_s17 + $0x68] sm:$0xff] %v246_v16 }
  0xed   : > { %v447_v34 = vpop.eup %446  ;;  %261 = vst [vmem:[%s753_s17 + $0x60] sm:$0xff] %v245_v17 }
  0xee   : > { %v449_v20 = vpop.eup %448  ;;  %v248_v21 = vmul.f32 %v447_v34, %v740_v28 }
  0xef   : > { %v247_v24 = vmul.f32 %v449_v20, %v743_v29 }
  0xf0   : > { %264 = vst [vmem:[%s753_s17 + $0x78] sm:$0xff] %v248_v21 }
  0xf1   : > { %263 = vst [vmem:[%s753_s17 + $0x70] sm:$0xff] %v247_v24 }
  0xf2   : > { %491 = shalt.err (!%p488_p10)
}
  0xf3   : > { %s492_s13 = scalar_lea.hbm %s787_s2, 2048  ;;  %s496_s20 = scalar_lea.hbm %s836_s1, 4096 }
  0xf4   : > { %p493_p0 = scmp.ne.s32.totalorder %s787_s2, %s492_s13  ;;  %p497_p1 = scmp.lt.s32.totalorder %s787_s2, %s836_s1 }
  0xf5   : > { %p498_p3 = scmp.lt.s32.totalorder %s496_s20, %s492_s13 }
  0xf6   : > { %p494_p2 = pnand %p493_p0, %p845_p12 }
  0xf7   : > { %p499_p6 = por %p498_p3, %p497_p1 }
  0xf8   : > { %p495_p9 = pneg %p494_p2 }
  0xfa   : > { %p500_p11 = pnand %p499_p6, %p495_p9 }
  0xfc   : > { %503 = shalt.err (!%p500_p11)
}
  0xfd   : > { %s548_s24 = smov 128   ;;  %s549_s26 = smov 8  }
  0xfe   : > { %370 = dma.vmem_to_hbm [thread:$0]  (%p845_p12), %s789_s27, 2048, %s787_s2, %s266_s10, %s548_s24, %s548_s24, %s549_s26  }
  0xff PF: > { %s294_s30 = sand.u32 1, %s530_s6   ;;  %p846_p13 = scmp.ne.s32.totalorder %s842_s19, 0 }
 0x100   : > { %p847_p4 = scmp.ge.s32.totalorder %s542_s9, 2  ;;  %s295_s17 = scalar_lea.sflag [#allocation4], %s294_s30 }
 0x102   : > { %p377_p5 = pnand %p847_p4, %p846_p13 }
 0x104   : > { %p378_p7 = pneg %p377_p5 }
 0x106   : > { %525 = dma.done.wait (%p378_p7), %s295_s17, 2048  }
 0x107   : > { %527 = vsyncadd (%p378_p7), %s295_s17, 4294965248  ;;  %p14_p8 = scmp.ge.s32.totalorder %s585_s12, 4   ;;  %s848_s6 = smov %s534_s7 }
 0x108   : > { %s849_s7 = smov %s538_s8  ;;  %s850_s8 = smov %s597_s15 }
 0x109   : > { %s851_s9 = smov %s585_s12  ;;  %16 = sbr.rel (!%p14_p8) target bundleno = 5 (0x5), region = 69 }
 0x10e   :  { %300 = vsyncpa [#allocation3], 1 }
 0x10f   :  { %302 = vsyncpa [#allocation3 + $0x1], 1 }
 0x110   :  { %303 = vsyncpa [#allocation4], 1 }
 0x111   :  { %305 = vsyncpa [#allocation4 + $0x1], 1 }

</bundles_post_ra>
